<compile_context>
chip_gen: v7x
topology: tpu7x:2x2x1
jax: 0.10.0
libtpu: 0.0.40
codegen_flags: <defaults>
</compile_context>

<pallas_src>
import functools

import jax
import jax.numpy as jnp
from jax.experimental import pallas as pl
from jax.experimental.pallas import tpu as pltpu

_LANE = 128      # TPU lane width
_SUBLANE = 8     # f32 sublane tile


def _vmem_limit_bytes():
    """Scoped-VMEM limit: 64 MiB on 128-MiB parts (v5e/v6e), cap-16 MiB on v7x."""
    try:
        cap = int(pltpu.get_tpu_info().vmem_capacity_bytes)
        return int(min(64 * 1024 * 1024,
                       max(cap - 16 * 1024 * 1024, 32 * 1024 * 1024)))
    except Exception:
        return 48 * 1024 * 1024  # safe on every generation (v7x has 64 MiB)


def _pick_tile_n(n, c):
    """Rows per batch tile: ~6 MiB (f32-equivalent) logits block, multiple of
    128, capped at 4096 rows (keeps the (rows, 1) per-row column temporaries
    small).  If the whole batch fits, use a single exact full-extent block."""
    target_bytes = 6 * 1024 * 1024
    rows = max(target_bytes // max(c * 4, 1), _LANE)
    rows = max((rows // _LANE) * _LANE, _LANE)
    rows = min(rows, 4096)
    if n <= rows:
        return n
    return rows


def _col_from_row(row_vec, eye):
    """(1, T) lane-oriented -> (T, 1) sublane-oriented via eye-masked lane reduces."""
    t = row_vec.shape[1]
    zero = jnp.zeros((), row_vec.dtype)
    chunks = []
    for k0 in range(0, t, _LANE):
        w = min(_LANE, t - k0)
        chunk = row_vec[:, k0:k0 + w]                        # (1, w)
        sel = jnp.where(eye[:w, :w], chunk, zero)            # (w, w)
        chunks.append(jnp.sum(sel, axis=1, keepdims=True))   # (w, 1)
    if len(chunks) == 1:
        return chunks[0]
    return jnp.concatenate(chunks, axis=0)                   # (T, 1)


def _row_from_col(col_vec, eye):
    """(T, 1) sublane-oriented -> (1, T) lane-oriented via eye-masked sublane reduces."""
    t = col_vec.shape[0]
    zero = jnp.zeros((), col_vec.dtype)
    chunks = []
    for k0 in range(0, t, _LANE):
        w = min(_LANE, t - k0)
        chunk = col_vec[k0:k0 + w, :]                        # (w, 1)
        sel = jnp.where(eye[:w, :w], chunk, zero)            # (w, w)
        chunks.append(jnp.sum(sel, axis=0, keepdims=True))   # (1, w)
    if len(chunks) == 1:
        return chunks[0]
    return jnp.concatenate(chunks, axis=1)                   # (1, T)


def _focal_loss_kernel(*refs, gamma, reduction, n_valid, tile_n, has_alpha):
    """One batch tile of focal loss.

    refs = ([alpha_ref (1,C)], logits_ref (tile_n,C), targets_ref (1,tile_n) i32,
            out_ref)
    """
    if has_alpha:
        alpha_ref, logits_ref, targets_ref, out_ref = refs
    else:
        logits_ref, targets_ref, out_ref = refs
        alpha_ref = None

    i = pl.program_id(0)

    x = logits_ref[...].astype(jnp.float32)                  # (tile_n, C)
    t_row = targets_ref[...]                                 # (1, tile_n) int32

    # per-lane class index, reused by the one-hot target (and alpha) gather
    cls = jax.lax.broadcasted_iota(jnp.int32, x.shape, 1)

    # (128,128) identity mask for lane<->sublane orientation changes
    eye = (jax.lax.broadcasted_iota(jnp.int32, (_LANE, _LANE), 0)
           == jax.lax.broadcasted_iota(jnp.int32, (_LANE, _LANE), 1))
    t_col = _col_from_row(t_row, eye)                        # (tile_n, 1) int32

    # cross_entropy(reduction='none'): ce_i = logsumexp(x_i) - x_i[t_i]
    m = jnp.max(x, axis=-1, keepdims=True)
    lse = jnp.log(jnp.sum(jnp.exp(x - m), axis=-1, keepdims=True)) + m
    onehot = cls == t_col                                    # (tile_n, C)
    tgt_logit = jnp.sum(jnp.where(onehot, x, 0.0), axis=-1, keepdims=True)

    ce = jnp.maximum(lse - tgt_logit, 0.0)                   # clamp: pt <= 1
    pt = jnp.exp(-ce)
    one_minus_pt = 1.0 - pt                                  # >= 0

    g = float(gamma)
    if g.is_integer() and 0 <= int(g) <= 8:
        gi = int(g)
        w = jnp.ones_like(one_minus_pt) if gi == 0 else one_minus_pt
        for _ in range(gi - 1):
            w = w * one_minus_pt
    else:
        w = jnp.power(jnp.maximum(one_minus_pt, 0.0), g)
    focal = w * ce                                           # (tile_n, 1)

    if has_alpha:
        # NOTE: the literal torch code broadcasts alpha.view(-1,1) against the
        # (N,) focal vector (an (N,N) outer product); we implement the intended
        # per-sample weighting alpha[target_i] * focal_i, as before.
        a = alpha_ref[...].astype(jnp.float32)               # (1, C)
        alpha_per = jnp.sum(jnp.where(onehot, a, 0.0), axis=-1, keepdims=True)
        focal = alpha_per * focal

    if reduction in ("mean", "sum"):
        # Zero rows past the true batch (last tile may hang off the edge),
        # reduce along sublanes to a (1,1) partial and park it at [0,0] of this
        # tile's private (8,128) output block; the wrapper sums the partials.
        rows = jax.lax.broadcasted_iota(jnp.int32, focal.shape, 0) + i * tile_n
        tile_sum = jnp.sum(jnp.where(rows < n_valid, focal, 0.0),
                           axis=0, keepdims=True)            # (1, 1)
        corner = ((jax.lax.broadcasted_iota(jnp.int32, (_SUBLANE, _LANE), 0) == 0)
                  & (jax.lax.broadcasted_iota(jnp.int32, (_SUBLANE, _LANE), 1) == 0))
        out_ref[0] = jnp.where(corner, tile_sum, 0.0)        # (8, 128)
    else:  # 'none' — lane-dense (1, tile_n) row; wrapper slices off padding
        focal_row = _row_from_col(focal, eye)                # (1, tile_n)
        out_ref[0] = focal_row


def focal_loss(inputs, targets, *, alpha=None, gamma=2, reduction="mean",
               block_rows=None):
    """JAX/Pallas equivalent of FocalLoss.forward(inputs, targets)."""
    n, c = inputs.shape

    tile_n = int(block_rows) if block_rows is not None else _pick_tile_n(n, c)
    if tile_n >= n:
        tile_n = n                                   # one exact full-extent tile
    else:
        tile_n = max(_LANE, (tile_n // _LANE) * _LANE)   # lane/sublane aligned
        if tile_n >= n:
            tile_n = n
    num_tiles = pl.cdiv(n, tile_n)

    x = inputs                                        # native dtype, no copies
    t = targets.astype(jnp.int32).reshape(1, n)       # lane-dense targets

    has_alpha = alpha is not None
    args = [x, t]
    in_specs = [
        pl.BlockSpec((tile_n, c), lambda i: (i, 0)),   # logits tile, full class dim
        pl.BlockSpec((1, tile_n), lambda i: (0, i)),   # lane-dense targets
    ]
    if has_alpha:
        a = jnp.asarray(alpha, jnp.float32).reshape(1, c)
        args = [a] + args
        in_specs = [pl.BlockSpec((1, c), lambda i: (0, 0))] + in_specs

    if reduction in ("mean", "sum"):
        # one (8,128) partial-sum block per tile -> grid stays 'parallel'
        out_shape = jax.ShapeDtypeStruct((num_tiles, _SUBLANE, _LANE), jnp.float32)
        out_spec = pl.BlockSpec((1, _SUBLANE, _LANE), lambda i: (i, 0, 0))
        out_bytes = num_tiles * _SUBLANE * _LANE * 4
    else:
        out_shape = jax.ShapeDtypeStruct((num_tiles, 1, tile_n), jnp.float32)
        out_spec = pl.BlockSpec((1, 1, tile_n), lambda i: (i, 0, 0))
        out_bytes = num_tiles * tile_n * 4

    bytes_accessed = (inputs.size * inputs.dtype.itemsize + n * 4 + out_bytes
                      + (c * 4 if has_alpha else 0))
    cost = pl.CostEstimate(
        flops=8 * n * c,
        transcendentals=n * c + 2 * n,
        bytes_accessed=int(bytes_accessed),
    )

    kernel = functools.partial(
        _focal_loss_kernel, gamma=float(gamma), reduction=reduction,
        n_valid=n, tile_n=tile_n, has_alpha=has_alpha)

    out = pl.pallas_call(
        kernel,
        out_shape=out_shape,
        grid_spec=pltpu.PrefetchScalarGridSpec(
            num_scalar_prefetch=0,
            grid=(num_tiles,),
            in_specs=in_specs,
            out_specs=out_spec,
        ),
        compiler_params=pltpu.CompilerParams(
            dimension_semantics=("parallel",),
            vmem_limit_bytes=_vmem_limit_bytes(),
        ),
        cost_estimate=cost,
    )(*args)

    if reduction == "mean":
        return jnp.sum(out) * (1.0 / n)
    if reduction == "sum":
        return jnp.sum(out)
    return out.reshape(-1)[:n]


def _reference_focal_loss(inputs, targets, alpha=None, gamma=2, reduction="mean"):
    x = inputs.astype(jnp.float32)
    lse = jax.scipy.special.logsumexp(x, axis=-1)
    ce = lse - jnp.take_along_axis(x, targets[:, None], axis=-1)[:, 0]
    pt = jnp.exp(-ce)
    fl = (1.0 - pt) ** gamma * ce
    if alpha is not None:
        fl = alpha[targets] * fl
    if reduction == "mean":
        return fl.mean()
    if reduction == "sum":
        return fl.sum()
    return fl


if __name__ == "__main__":
    key = jax.random.PRNGKey(0)
    k1, k2, k3, k4, k5 = jax.random.split(key, 5)

    # Small shapes consistent with a classification head: batch=8, classes=32.
    N, C = 8, 32
    logits = jax.random.normal(k1, (N, C), dtype=jnp.float32)
    targets = jax.random.randint(k2, (N,), 0, C, dtype=jnp.int32)
    alpha = jax.random.uniform(k3, (C,), dtype=jnp.float32)

    # Default module config: alpha=None, gamma=2, reduction='mean'
    out_mean = jax.block_until_ready(focal_loss(logits, targets))
    ref_mean = _reference_focal_loss(logits, targets)
    assert jnp.allclose(out_mean, ref_mean, rtol=1e-5, atol=1e-5)

    # reduction='sum'
    out_sum = jax.block_until_ready(focal_loss(logits, targets, reduction="sum"))
    ref_sum = _reference_focal_loss(logits, targets, reduction="sum")
    assert jnp.allclose(out_sum, ref_sum, rtol=1e-5, atol=1e-5)

    # alpha weighting + reduction='none' (lane-dense output path)
    out_none = jax.block_until_ready(
        focal_loss(logits, targets, alpha=alpha, gamma=2, reduction="none"))
    ref_none = _reference_focal_loss(logits, targets, alpha=alpha, gamma=2,
                                     reduction="none")
    assert out_none.shape == (N,)
    assert jnp.allclose(out_none, ref_none, rtol=1e-5, atol=1e-5)

    # Multi-tile / ragged-last-tile path (still small): batch=300, classes=33,
    # forced 128-row tiles -> 3 grid steps, unpadded odd C, partial final tile.
    N2, C2 = 300, 33
    logits2 = jax.random.normal(k4, (N2, C2), dtype=jnp.float32)
    targets2 = jax.random.randint(k5, (N2,), 0, C2, dtype=jnp.int32)

    out2 = jax.block_until_ready(
        focal_loss(logits2, targets2, reduction="mean", block_rows=128))
    ref2 = _reference_focal_loss(logits2, targets2, reduction="mean")
    assert jnp.allclose(out2, ref2, rtol=1e-4, atol=1e-4)

    out2n = jax.block_until_ready(
        focal_loss(logits2, targets2, reduction="none", block_rows=128))
    ref2n = _reference_focal_loss(logits2, targets2, reduction="none")
    assert out2n.shape == (N2,)
    assert jnp.allclose(out2n, ref2n, rtol=1e-4, atol=1e-4)

    print("KERNEL_OK")
</pallas_src>

<mosaic_0001>
module attributes {stable_mosaic.version = 11 : i64} {
  func.func @_focal_loss_kernel(%arg0: i32, %arg1: memref<8x32xf32, #tpu.memory_space<vmem>>, %arg2: memref<1x8xi32, #tpu.memory_space<vmem>>, %arg3: memref<1x8x128xf32, #tpu.memory_space<vmem>>) attributes {dimension_semantics = [#tpu.dimension_semantics<parallel>], iteration_bounds = array<i64: 1>, scalar_prefetch = 0 : i64, scratch_operands = 0 : i64, tpu.core_type = #tpu.core_type<tc>, window_params = [{transform_indices = @transform_0, window_bounds = array<i64: 8, 32>}, {transform_indices = @transform_1, window_bounds = array<i64: 1, 8>}, {transform_indices = @transform_2, window_bounds = array<i64: 1, 8, 128>}]} {
    %c0 = arith.constant 0 : index
    %c0_0 = arith.constant 0 : index
    %0 = vector.load %arg1[%c0, %c0_0] : memref<8x32xf32, #tpu.memory_space<vmem>>, vector<8x32xf32>
    %c0_1 = arith.constant 0 : index
    %c0_2 = arith.constant 0 : index
    %1 = vector.load %arg2[%c0_1, %c0_2] : memref<1x8xi32, #tpu.memory_space<vmem>>, vector<1x8xi32>
    %2 = tpu.iota {dimensions = array<i32: 1>} : vector<8x32xi32>
    %3 = tpu.iota {dimensions = array<i32: 0>} : vector<128x128xi32>
    %4 = tpu.iota {dimensions = array<i32: 1>} : vector<128x128xi32>
    %5 = arith.cmpi eq, %3, %4 : vector<128x128xi32>
    %6 = vector.extract_strided_slice %5 {offsets = [0, 0], sizes = [8, 8], strides = [1, 1]} : vector<128x128xi1> to vector<8x8xi1>
    %c0_i32 = arith.constant 0 : i32
    %7 = vector.shape_cast %1 : vector<1x8xi32> to vector<1x8xi32>
    %8 = vector.broadcast %7 : vector<1x8xi32> to vector<8x8xi32>
    %9 = vector.broadcast %c0_i32 : i32 to vector<8x8xi32>
    %10 = arith.select %6, %8, %9 : vector<8x8xi1>, vector<8x8xi32>
    %cst = arith.constant dense<0> : vector<8xi32>
    %11 = vector.multi_reduction <add>, %10, %cst [1] : vector<8x8xi32> to vector<8xi32>
    %12 = vector.shape_cast %11 : vector<8xi32> to vector<8x1xi32>
    %cst_3 = arith.constant dense<0xFF800000> : vector<8xf32>
    %13 = vector.multi_reduction <maximumf>, %0, %cst_3 [1] : vector<8x32xf32> to vector<8xf32>
    %14 = vector.shape_cast %13 : vector<8xf32> to vector<8x1xf32>
    %15 = vector.broadcast %14 : vector<8x1xf32> to vector<8x32xf32>
    %16 = arith.subf %0, %15 : vector<8x32xf32>
    %17 = math.exp %16 : vector<8x32xf32>
    %cst_4 = arith.constant dense<0.000000e+00> : vector<8xf32>
    %18 = vector.multi_reduction <add>, %17, %cst_4 [1] : vector<8x32xf32> to vector<8xf32>
    %19 = vector.shape_cast %18 : vector<8xf32> to vector<8x1xf32>
    %20 = math.log %19 : vector<8x1xf32>
    %21 = arith.addf %20, %14 : vector<8x1xf32>
    %22 = vector.broadcast %12 : vector<8x1xi32> to vector<8x32xi32>
    %23 = arith.cmpi eq, %2, %22 : vector<8x32xi32>
    %cst_5 = arith.constant 0.000000e+00 : f32
    %24 = vector.broadcast %cst_5 : f32 to vector<8x32xf32>
    %25 = arith.select %23, %0, %24 : vector<8x32xi1>, vector<8x32xf32>
    %cst_6 = arith.constant dense<0.000000e+00> : vector<8xf32>
    %26 = vector.multi_reduction <add>, %25, %cst_6 [1] : vector<8x32xf32> to vector<8xf32>
    %27 = vector.shape_cast %26 : vector<8xf32> to vector<8x1xf32>
    %28 = arith.subf %21, %27 : vector<8x1xf32>
    %cst_7 = arith.constant 0.000000e+00 : f32
    %29 = vector.broadcast %cst_7 : f32 to vector<8x1xf32>
    %30 = arith.maximumf %28, %29 : vector<8x1xf32>
    %cst_8 = arith.constant 0.000000e+00 : f32
    %31 = vector.broadcast %cst_8 : f32 to vector<8x1xf32>
    %32 = arith.subf %31, %30 : vector<8x1xf32>
    %33 = math.exp %32 : vector<8x1xf32>
    %cst_9 = arith.constant 1.000000e+00 : f32
    %34 = vector.broadcast %cst_9 : f32 to vector<8x1xf32>
    %35 = arith.subf %34, %33 : vector<8x1xf32>
    %36 = arith.mulf %35, %35 : vector<8x1xf32>
    %37 = arith.mulf %36, %30 : vector<8x1xf32>
    %38 = tpu.iota {dimensions = array<i32: 0>} : vector<8x1xi32>
    %c8_i32 = arith.constant 8 : i32
    %39 = arith.muli %arg0, %c8_i32 : i32
    %40 = vector.broadcast %39 : i32 to vector<8x1xi32>
    %41 = arith.addi %38, %40 : vector<8x1xi32>
    %c8_i32_10 = arith.constant 8 : i32
    %42 = vector.broadcast %c8_i32_10 : i32 to vector<8x1xi32>
    %43 = arith.cmpi slt, %41, %42 : vector<8x1xi32>
    %cst_11 = arith.constant 0.000000e+00 : f32
    %44 = vector.broadcast %cst_11 : f32 to vector<8x1xf32>
    %45 = arith.select %43, %37, %44 : vector<8x1xi1>, vector<8x1xf32>
    %cst_12 = arith.constant dense<0.000000e+00> : vector<1xf32>
    %46 = vector.multi_reduction <add>, %45, %cst_12 [0] : vector<8x1xf32> to vector<1xf32>
    %47 = vector.shape_cast %46 : vector<1xf32> to vector<1x1xf32>
    %48 = tpu.iota {dimensions = array<i32: 0>} : vector<8x128xi32>
    %c0_i32_13 = arith.constant 0 : i32
    %49 = vector.broadcast %c0_i32_13 : i32 to vector<8x128xi32>
    %50 = arith.cmpi eq, %48, %49 : vector<8x128xi32>
    %51 = tpu.iota {dimensions = array<i32: 1>} : vector<8x128xi32>
    %c0_i32_14 = arith.constant 0 : i32
    %52 = vector.broadcast %c0_i32_14 : i32 to vector<8x128xi32>
    %53 = arith.cmpi eq, %51, %52 : vector<8x128xi32>
    %54 = arith.andi %50, %53 : vector<8x128xi1>
    %cst_15 = arith.constant 0.000000e+00 : f32
    %55 = vector.shape_cast %47 : vector<1x1xf32> to vector<1x1xf32>
    %56 = vector.broadcast %55 : vector<1x1xf32> to vector<8x128xf32>
    %57 = vector.broadcast %cst_15 : f32 to vector<8x128xf32>
    %58 = arith.select %54, %56, %57 : vector<8x128xi1>, vector<8x128xf32>
    %c0_16 = arith.constant 0 : index
    %c0_17 = arith.constant 0 : index
    %c0_18 = arith.constant 0 : index
    %59 = vector.load %arg3[%c0_16, %c0_17, %c0_18] : memref<1x8x128xf32, #tpu.memory_space<vmem>>, vector<1x8x128xf32>
    %60 = vector.shape_cast %59 : vector<1x8x128xf32> to vector<8x128xf32>
    %61 = vector.shape_cast %58 : vector<8x128xf32> to vector<1x8x128xf32>
    tpu.vector_store %arg3[%c0_16, %c0_17, %c0_18], %61 {strides = array<i32>} : memref<1x8x128xf32, #tpu.memory_space<vmem>>, vector<1x8x128xf32>,
    return
  }
  func.func @transform_0(%arg0: i32) -> (i32, i32) {
    %c0_i32 = arith.constant 0 : i32
    %c0_i32_0 = arith.constant 0 : i32
    return %arg0, %c0_i32 : i32, i32
  }
  func.func @transform_1(%arg0: i32) -> (i32, i32) {
    %c0_i32 = arith.constant 0 : i32
    %c0_i32_0 = arith.constant 0 : i32
    return %c0_i32, %arg0 : i32, i32
  }
  func.func @transform_2(%arg0: i32) -> (i32, i32, i32) {
    %c0_i32 = arith.constant 0 : i32
    %c0_i32_0 = arith.constant 0 : i32
    %c0_i32_1 = arith.constant 0 : i32
    return %arg0, %c0_i32, %c0_i32_0 : i32, i32, i32
  }
}

</mosaic_0001>

<bundles_post_ra>
// kernel: tpu_custom_call.1
= control target key start
LH: loop header
LB: loop body
LE: loop exit
PB: predicated region body
PF: predicated region fallthrough
CT: control target
= control target key end

     0   :  { %7 = vsyncpa [#allocation3], 0  ;;  %s211_s0 = inlined_call_operand.hbm [shape: f32[8,32], index: 0, kind: input, shape index: {}]   ;;  %s212_s1 = inlined_call_operand.vmem [shape: s32[1,8], index: 1, kind: input, shape index: {}]   ;;  %s213_s2 = inlined_call_operand.hbm [shape: f32[1,8,128], index: 2, kind: output, shape index: {}]  }
   0x1   :  { %8 = vsyncpa [#allocation4], 0  ;;  %s164_s9 = smov [#allocation2]   ;;  %s116_s13 = scalar_lea.hbm %s211_s0, 128 }
   0x2   :  { %s15_s10 = sshll.u32 %s164_s9, 4  ;;  %p117_p0 = scmp.ne.s32.totalorder %s211_s0, %s116_s13  ;;  %s16_s10 = int_to_ptr.vmem [resolvable:$true] %s15_s10 }
   0x3   :  { %p120_p1 = scmp.lt.u32.totalorder %s116_s13, %s211_s0 }
   0x5   :  { %p122_p2 = pnand %p120_p1, %p117_p0 }
   0x7   :  { %125 = shalt.err (!%p122_p2)
}
   0x8   :  { %s126_s18 = scalar_lea.vmem %s16_s10, 128  ;;  %p131_p4 = scmp.lt.s32.totalorder %s16_s10, %s16_s10 }
   0x9   :  { %p127_p3 = scmp.ne.s32.totalorder %s16_s10, %s126_s18  ;;  %p132_p5 = scmp.lt.s32.totalorder %s126_s18, %s126_s18 }
   0xb   :  { %p133_p6 = por %p132_p5, %p131_p4 }
   0xd   :  { %p134_p7 = pnand %p133_p6, %p127_p3 }
   0xf   :  { %137 = shalt.err (!%p134_p7)
}
  0x10   :  { %18 = dma.hbm_to_vmem [thread:$0]  %s211_s0, 128, %s16_s10, [#allocation3]  }
  0x11   :  { %160 = dma.done.wait [#allocation3], 128  }
  0x12   :  { %161 = vsyncadd [#allocation3], 4294967168  ;;  %v26_v0 = vlaneseq  ;;  %vm50_vm0 = vcmask 261120   ;;  %vm36_vm2 = vcmask 64512   ;;  %v24_v3 = vld [vmem:[#allocation2] sm:$0xff]  ;;  %s165_s0 = smov [#allocation5]  }
  0x13   :  { %v107_v4 = vld [vmem:[%s212_s1] ss:$0 sm:$0xff]  ;;  %v51_v5 = vsel %vm50_vm0, %v24_v3, -inf  ;;  %s98_s1 = sshll.u32 %s165_s0, 4  ;;  %s99_s1 = int_to_ptr.vmem [resolvable:$true] %s98_s1 }
  0x14   :  { %v27_v1 = vand.u32 127, %v26_v0  ;;  %v29_v2 = vshrl.u32 %v26_v0, 7  ;;  %52 = vmax.xlane.f32.xlu0 %v51_v5  ;;  %s138_s23 = scalar_lea.vmem %s99_s1, 128  ;;  %p143_p9 = scmp.lt.s32.totalorder %s99_s1, %s99_s1 }
  0x15   :  { %p139_p8 = scmp.ne.s32.totalorder %s99_s1, %s138_s23  ;;  %p144_p10 = scmp.lt.s32.totalorder %s138_s23, %s138_s23 }
  0x16   :  { %vm30_vm1 = vcmp.eq.s32.totalorder %v29_v2, %v27_v1  ;;  %vm87_vm4 = vcmp.eq.s32.totalorder %v29_v2, 0  ;;  %vm88_vm5 = vcmp.eq.s32.totalorder %v27_v1, 0 }
  0x17   :  { %v35_v6 = vsel %vm30_vm1, %v107_v4, 0  ;;  %vm89_vm6 = vmand %vm87_vm4, %vm88_vm5  ;;  %p145_p11 = por %p144_p10, %p143_p9 }
  0x18   :  { %v37_v7 = vsel %vm36_vm2, %v35_v6, 0 }
  0x19   :  { %v39_v8 = vshrl.u32 %v37_v7, 16  ;;  %v38_v9 = vand.u32 65535, %v37_v7  ;;  %p146_p12 = pnand %p145_p11, %p139_p8 }
  0x1b   :  { %v41_v10 = vcvt.s32.f32 %v39_v8  ;;  %v40_v11 = vcvt.s32.f32 %v38_v9 }
  0x1d   :  { %44 = vadd.xlane.f32.xlu0 %v41_v10  ;;  %42 = vadd.xlane.f32.xlu1 %v40_v11 }
  0xa1   :  { %v53_v12 = vpop.xlane.xlu0 %52 }
  0xa2   :  { %v54_v13 = vsub.f32 %v24_v3, %v53_v12 }
  0xa4   :  { %v55_v14 = vmul.f32 1.442695, %v54_v13 }
  0xa6   :  { %110 = vpow2.f32 %v55_v14 }
  0xaa   :  { %v45_v15 = vpop.xlane.xlu0 %44  ;;  %v43_v16 = vpop.xlane.xlu1 %42 }
  0xab   :  { %v47_v17 = vcvt.f32.s32 %v45_v15  ;;  %v46_v18 = vcvt.f32.s32 %v43_v16 }
  0xad   :  { %v48_v19 = vshll.u32 %v47_v17, 16 }
  0xaf   :  { %v49_v20 = vadd.s32 %v48_v19, %v46_v18 }
  0xb0   :  { %v111_v23 = vpop.eup %110 }
  0xb1   :  { %vm63_vm3 = vcmp.eq.s32.totalorder %v27_v1, %v49_v20  ;;  %v57_v24 = vsel %vm50_vm0, %v111_v23, 0.0 }
  0xb2   :  { %v64_v21 = vsel %vm63_vm3, %v24_v3, 0.0  ;;  %58 = vadd.xlane.f32.xlu1 %v57_v24 }
  0xb3   :  { %v65_v22 = vsel %vm50_vm0, %v64_v21, 0.0 }
  0xb4   :  { %66 = vadd.xlane.f32.xlu0 %v65_v22 }
 0x13f   :  { %v59_v25 = vpop.xlane.xlu1 %58 }
 0x140   :  { %112 = vlog2.f32 %v59_v25 }
 0x141   :  { %v67_v28 = vpop.xlane.xlu0 %66 }
 0x14a   :  { %v113_v26 = vpop.eup %112 }
 0x14b   :  { %v61_v27 = vmul.f32 0.6931472, %v113_v26 }
 0x14d   :  { %v62_v29 = vadd.f32 %v61_v27, %v53_v12 }
 0x14f   :  { %v68_v30 = vsub.f32 %v62_v29, %v67_v28 }
 0x151   :  { %v69_v31 = vmax.f32 %v68_v30, 0.0 }
 0x153   :  { %v70_v32 = vsub.f32 0.0, %v69_v31 }
 0x155   :  { %v71_v33 = vmul.f32 1.442695, %v70_v32 }
 0x157   :  { %114 = vpow2.f32 %v71_v33 }
 0x161   :  { %v115_v34 = vpop.eup %114 }
 0x162   :  { %v73_v35 = vsub.f32 1.0, %v115_v34 }
 0x164   :  { %v74_v36 = vmul.f32 %v73_v35, %v73_v35 }
 0x166   :  { %v75_v37 = vmul.f32 %v74_v36, %v69_v31 }
 0x168   :  { %v81_v38 = vrot.slane %v75_v37, 4 }
 0x16a   :  { %v82_v39 = vadd.f32 %v81_v38, %v75_v37 }
 0x16c   :  { %v83_v40 = vrot.slane %v82_v39, 2 }
 0x16e   :  { %v84_v41 = vadd.f32 %v83_v40, %v82_v39 }
 0x170   :  { %v85_v42 = vrot.slane %v84_v41, 1 }
 0x172   :  { %v86_v43 = vadd.f32 %v85_v42, %v84_v41 }
 0x174   :  { %v90_v44 = vsel %vm89_vm6, %v86_v43, 0.0 }
 0x175   :  { %91 = vst [vmem:[#allocation5] sm:$0xff] %v90_v44 }
 0x176   :  { %149 = shalt.err (!%p146_p12)
}
 0x177   :  { %s150_s26 = scalar_lea.hbm %s213_s2, 128 }
 0x178   :  { %p151_p13 = scmp.ne.s32.totalorder %s213_s2, %s150_s26  ;;  %p154_p0 = scmp.lt.u32.totalorder %s150_s26, %s213_s2 }
 0x17a   :  { %p156_p1 = pnand %p154_p0, %p151_p13 }
 0x17c   :  { %159 = shalt.err (!%p156_p1)
}
 0x17d   :  { %101 = dma.vmem_to_hbm [thread:$0]  %s99_s1, 128, %s213_s2, [#allocation4]  }
 0x17e   :  { %162 = dma.done.wait [#allocation4], 128  }
 0x17f   :  { %163 = vsyncadd [#allocation4], 4294967168 }
 0x180   :  { %105 = vsyncpa [#allocation3], 1 }
 0x181   :  { %106 = vsyncpa [#allocation4], 1 }

</bundles_post_ra>
